<compile_context>
chip_gen: v5e
topology: v5e:2x2
jax: 0.10.0
libtpu: 0.0.40
codegen_flags: <defaults>
</compile_context>

<pallas_src>
import functools

import jax
import jax.numpy as jnp
from jax import lax
from jax.experimental import pallas as pl
from jax.experimental.pallas import tpu as pltpu

N_EMBD = 32
HIDDEN = 4 * N_EMBD

_ROW_CHUNK = 128  # rows processed per inner step inside a grid tile


def _round_up(n, m):
    return ((n + m - 1) // m) * m


def _choose_row_tile(m, row_tile):
    """Rows per grid step: large enough to amortize the ~0.35us per-step cost,
    small enough that the grid has ~>=8 steps (megacore sharding on v7x and a
    real pipeline steady state)."""
    if m <= _ROW_CHUNK:
        return _round_up(m, 8)  # single tile; keep sublane (8) alignment
    cap = max(_ROW_CHUNK, _round_up(pl.cdiv(m, 8), _ROW_CHUNK))
    row_tile = _round_up(max(row_tile, _ROW_CHUNK), _ROW_CHUNK)
    return min(row_tile, cap, _round_up(m, _ROW_CHUNK))


def _ffn_kernel(x_ref, w1_ref, b1_ref, w2_ref, b2_ref, o_ref, *, chunk, precision):
    # x_ref: (TM, C) input dtype   w1_ref: (C, H) compute dtype   b1_ref: (1, H) f32
    # w2_ref: (H, C) compute dtype b2_ref: (1, C) f32             o_ref: (TM, C) out dtype
    w1 = w1_ref[...]
    b1 = b1_ref[...]
    w2 = w2_ref[...]
    b2 = b2_ref[...]
    n_chunks = x_ref.shape[0] // chunk

    def body(c, carry):
        r = pl.multiple_of(c * chunk, chunk)
        # Cast to the MXU dtype in-kernel (keeps the HBM x stream a single,
        # unpadded read; no wrapper-side astype/pad pass).
        xc = x_ref[pl.ds(r, chunk), :].astype(w1.dtype)
        # Linear 1 (MXU, f32 accumulation) + bias + ReLU (VPU, f32).
        h = jnp.dot(xc, w1, preferred_element_type=jnp.float32, precision=precision)
        h = jnp.maximum(h + b1, 0.0)
        # Linear 2 (cast hidden back to the MXU dtype, accumulate in f32).
        y = jnp.dot(h.astype(w2.dtype), w2,
                    preferred_element_type=jnp.float32, precision=precision)
        o_ref[pl.ds(r, chunk), :] = (y + b2).astype(o_ref.dtype)
        return carry

    # Mem-bound kernel: no unroll (ample compute slack; avoids vreg spills).
    lax.fori_loop(0, n_chunks, body, None, unroll=False)


def feed_forward(x, w1, b1, w2, b2, *, compute_dtype=jnp.bfloat16,
                 out_dtype=None, row_tile=2048):
    """x: (B, T, C) -> (B, T, C).

    compute_dtype: dtype fed to the MXU (bf16 default, f32 accumulation).
                   float32 is a correctness/debug mode (HIGHEST precision),
                   not a perf mode (esp. on v5e).
    out_dtype:     output dtype; None keeps x.dtype.  Pass jnp.bfloat16 to
                   halve the dominant HBM write stream when downstream ops
                   accept bf16.
    row_tile:      target rows per grid step (rounded to a multiple of 128).
    """
    B, T, C = x.shape
    H = w1.shape[1]
    M = B * T

    in_dt = jnp.dtype(compute_dtype)
    out_dt = jnp.dtype(out_dtype) if out_dtype is not None else x.dtype
    x_dt = x.dtype

    # ---- row tiling (no channel padding; blocks use full channel extents) --
    TM = _choose_row_tile(M, row_tile)
    chunk = min(_ROW_CHUNK, TM)          # TM is a multiple of chunk by construction
    grid = (pl.cdiv(M, TM),)             # partial last block handled by Pallas

    # x / y stay unpadded in HBM.  Only the tiny weights/biases are prepared
    # in the wrapper (C*H + H*C elements; negligible).
    x2d = x.reshape(M, C)                # free reshape, no HBM pass
    w1c = w1.astype(in_dt)
    w2c = w2.astype(in_dt)
    b1f = b1.astype(jnp.float32).reshape(1, H)
    b2f = b2.astype(jnp.float32).reshape(1, C)

    # f32 debug path needs HIGHEST precision for PyTorch parity; bf16 path is
    # native single-pass MXU.
    precision = (lax.Precision.HIGHEST if in_dt == jnp.dtype(jnp.float32)
                 else lax.Precision.DEFAULT)

    # ---- explicit VMEM budget (double-buffered x/y + resident weights) -----
    vmem_bytes = (
        2 * TM * C * x_dt.itemsize             # x tiles (double-buffered)
        + 2 * TM * C * out_dt.itemsize         # y tiles (double-buffered)
        + 2 * (C * H + H * C) * in_dt.itemsize # W1/W2 (Pallas double-buffers)
        + 4 * (H + C) * 4                      # biases
        + chunk * (H + C) * 4                  # f32 hidden/y working chunk
    )
    # 48 MiB cap keeps headroom on v7x (64 MiB physical per TC); generous
    # slack for compiler-internal scratch.
    vmem_limit = int(min(vmem_bytes + (16 << 20), 48 << 20))

    cost = pl.CostEstimate(
        flops=4 * M * C * H,                   # two matmuls
        transcendentals=0,
        bytes_accessed=(M * C * x_dt.itemsize
                        + 2 * C * H * in_dt.itemsize
                        + (H + C) * 4
                        + M * C * out_dt.itemsize),
    )

    out2d = pl.pallas_call(
        functools.partial(_ffn_kernel, chunk=chunk, precision=precision),
        out_shape=jax.ShapeDtypeStruct((M, C), out_dt),
        grid_spec=pltpu.PrefetchScalarGridSpec(
            num_scalar_prefetch=0,
            grid=grid,
            in_specs=[
                pl.BlockSpec((TM, C), lambda i: (i, 0)),  # x: per-row tile
                pl.BlockSpec((C, H), lambda i: (0, 0)),   # W1: VMEM-resident
                pl.BlockSpec((1, H), lambda i: (0, 0)),   # b1: VMEM-resident
                pl.BlockSpec((H, C), lambda i: (0, 0)),   # W2: VMEM-resident
                pl.BlockSpec((1, C), lambda i: (0, 0)),   # b2: VMEM-resident
            ],
            out_specs=pl.BlockSpec((TM, C), lambda i: (i, 0)),
        ),
        compiler_params=pltpu.CompilerParams(
            dimension_semantics=("parallel",),   # row tiles are independent
            vmem_limit_bytes=vmem_limit,
        ),
        cost_estimate=cost,
    )(x2d, w1c, b1f, w2c, b2f)

    return out2d.reshape(B, T, C)


def init_params(key, n_embd=N_EMBD):
    """Deterministic init mimicking PyTorch nn.Linear defaults: U(+-1/sqrt(fan_in))."""
    k1, k2, k3, k4 = jax.random.split(key, 4)
    hidden = 4 * n_embd
    lim1 = 1.0 / jnp.sqrt(jnp.float32(n_embd))
    lim2 = 1.0 / jnp.sqrt(jnp.float32(hidden))
    w1 = jax.random.uniform(k1, (n_embd, hidden), jnp.float32, -lim1, lim1)
    b1 = jax.random.uniform(k2, (hidden,), jnp.float32, -lim1, lim1)
    w2 = jax.random.uniform(k3, (hidden, n_embd), jnp.float32, -lim2, lim2)
    b2 = jax.random.uniform(k4, (n_embd,), jnp.float32, -lim2, lim2)
    return w1, b1, w2, b2


if __name__ == "__main__":
    key = jax.random.PRNGKey(0)
    k_params, k_x = jax.random.split(key)

    B, T, C = 2, 8, N_EMBD
    x = jax.random.normal(k_x, (B, T, C), jnp.float32)
    w1, b1, w2, b2 = init_params(k_params)
    x2d = x.reshape(-1, C)

    # Exact reference (f32 matmuls at HIGHEST precision == PyTorch semantics).
    h_ref = jnp.maximum(jnp.dot(x2d, w1, precision=lax.Precision.HIGHEST) + b1, 0.0)
    ref_f32 = (jnp.dot(h_ref, w2, precision=lax.Precision.HIGHEST) + b2).reshape(B, T, C)

    # 1) f32 MXU path: correctness/debug mode, PyTorch-level parity.
    out_f32 = jax.block_until_ready(
        feed_forward(x, w1, b1, w2, b2, compute_dtype=jnp.float32))
    assert out_f32.shape == (B, T, C) and out_f32.dtype == x.dtype
    assert jnp.allclose(out_f32, ref_f32, atol=1e-4, rtol=1e-4)

    # 2) bf16 MXU path (default; the recommended perf config on all gens).
    out_bf16 = jax.block_until_ready(feed_forward(x, w1, b1, w2, b2))
    h_b = jnp.maximum(
        jnp.dot(x2d.astype(jnp.bfloat16), w1.astype(jnp.bfloat16),
                preferred_element_type=jnp.float32) + b1, 0.0)
    ref_bf16 = (jnp.dot(h_b.astype(jnp.bfloat16), w2.astype(jnp.bfloat16),
                        preferred_element_type=jnp.float32) + b2).reshape(B, T, C)
    assert out_bf16.shape == (B, T, C) and out_bf16.dtype == x.dtype
    assert jnp.allclose(out_bf16, ref_bf16, atol=1e-2, rtol=1e-2)
    assert jnp.allclose(out_bf16, ref_f32, atol=5e-2, rtol=5e-2)

    # 3) Fully mem-optimized config: bf16 output halves the dominant HBM write.
    out_lo = jax.block_until_ready(
        feed_forward(x, w1, b1, w2, b2, out_dtype=jnp.bfloat16))
    assert out_lo.shape == (B, T, C) and out_lo.dtype == jnp.bfloat16
    assert jnp.allclose(out_lo.astype(jnp.float32), ref_f32, atol=1e-1, rtol=1e-1)

    print("KERNEL_OK")
</pallas_src>

<mosaic_0001>
module attributes {stable_mosaic.version = 11 : i64} {
  func.func @_ffn_kernel(%arg0: i32, %arg1: memref<16x32xf32, #tpu.memory_space<vmem>>, %arg2: memref<32x128xf32, #tpu.memory_space<vmem>>, %arg3: memref<1x128xf32, #tpu.memory_space<vmem>>, %arg4: memref<128x32xf32, #tpu.memory_space<vmem>>, %arg5: memref<1x32xf32, #tpu.memory_space<vmem>>, %arg6: memref<16x32xf32, #tpu.memory_space<vmem>>) attributes {dimension_semantics = [#tpu.dimension_semantics<parallel>], iteration_bounds = array<i64: 1>, scalar_prefetch = 0 : i64, scratch_operands = 0 : i64, tpu.core_type = #tpu.core_type<tc>, window_params = [{transform_indices = @transform_0, window_bounds = array<i64: 16, 32>}, {pipeline_mode = #tpu.pipeline_mode<synchronous>, transform_indices = @transform_1, window_bounds = array<i64: 32, 128>}, {pipeline_mode = #tpu.pipeline_mode<synchronous>, transform_indices = @transform_2, window_bounds = array<i64: 1, 128>}, {pipeline_mode = #tpu.pipeline_mode<synchronous>, transform_indices = @transform_3, window_bounds = array<i64: 128, 32>}, {pipeline_mode = #tpu.pipeline_mode<synchronous>, transform_indices = @transform_4, window_bounds = array<i64: 1, 32>}, {transform_indices = @transform_5, window_bounds = array<i64: 16, 32>}]} {
    %c0 = arith.constant 0 : index
    %c0_0 = arith.constant 0 : index
    %0 = vector.load %arg2[%c0, %c0_0] : memref<32x128xf32, #tpu.memory_space<vmem>>, vector<32x128xf32>
    %c0_1 = arith.constant 0 : index
    %c0_2 = arith.constant 0 : index
    %1 = vector.load %arg3[%c0_1, %c0_2] : memref<1x128xf32, #tpu.memory_space<vmem>>, vector<1x128xf32>
    %c0_3 = arith.constant 0 : index
    %c0_4 = arith.constant 0 : index
    %2 = vector.load %arg4[%c0_3, %c0_4] : memref<128x32xf32, #tpu.memory_space<vmem>>, vector<128x32xf32>
    %c0_5 = arith.constant 0 : index
    %c0_6 = arith.constant 0 : index
    %3 = vector.load %arg5[%c0_5, %c0_6] : memref<1x32xf32, #tpu.memory_space<vmem>>, vector<1x32xf32>
    %c0_i32 = arith.constant 0 : i32
    %c16_i32 = arith.constant 16 : i32
    %4 = arith.muli %c0_i32, %c16_i32 : i32
    %5 = tpu.assume_multiple %4, 16 : i32
    %6 = arith.index_cast %5 : i32 to index
    %c0_7 = arith.constant 0 : index
    %7 = vector.load %arg1[%6, %c0_7] : memref<16x32xf32, #tpu.memory_space<vmem>>, vector<16x32xf32>
    %cst = arith.constant dense<0.000000e+00> : vector<16x128xf32>
    %8 = tpu.matmul %7, %0, %cst {dimension_numbers = #tpu.dot_dimension_numbers<[1], [0], [0], [1], [0, 0, 1, 1], [], []>, precision = #tpu.contract_precision<fp32>} : vector<16x32xf32>, vector<32x128xf32>, vector<16x128xf32> -> vector<16x128xf32>
    %9 = vector.broadcast %1 : vector<1x128xf32> to vector<16x128xf32>
    %10 = arith.addf %8, %9 : vector<16x128xf32>
    %cst_8 = arith.constant 0.000000e+00 : f32
    %11 = vector.broadcast %cst_8 : f32 to vector<16x128xf32>
    %12 = arith.maximumf %10, %11 : vector<16x128xf32>
    %cst_9 = arith.constant dense<0.000000e+00> : vector<16x32xf32>
    %13 = tpu.matmul %12, %2, %cst_9 {dimension_numbers = #tpu.dot_dimension_numbers<[1], [0], [0], [1], [0, 0, 1, 1], [], []>, precision = #tpu.contract_precision<fp32>} : vector<16x128xf32>, vector<128x32xf32>, vector<16x32xf32> -> vector<16x32xf32>
    %14 = vector.broadcast %3 : vector<1x32xf32> to vector<16x32xf32>
    %15 = arith.addf %13, %14 : vector<16x32xf32>
    %16 = arith.index_cast %5 : i32 to index
    %c0_10 = arith.constant 0 : index
    %17 = vector.load %arg6[%16, %c0_10] : memref<16x32xf32, #tpu.memory_space<vmem>>, vector<16x32xf32>
    tpu.vector_store %arg6[%16, %c0_10], %15 {strides = array<i32>} : memref<16x32xf32, #tpu.memory_space<vmem>>, vector<16x32xf32>,
    %c1_i32 = arith.constant 1 : i32
    return
  }
  func.func @transform_0(%arg0: i32) -> (i32, i32) {
    %c0_i32 = arith.constant 0 : i32
    %c0_i32_0 = arith.constant 0 : i32
    return %arg0, %c0_i32 : i32, i32
  }
  func.func @transform_1(%arg0: i32) -> (i32, i32) {
    %c0_i32 = arith.constant 0 : i32
    %c0_i32_0 = arith.constant 0 : i32
    %c0_i32_1 = arith.constant 0 : i32
    return %c0_i32, %c0_i32_0 : i32, i32
  }
  func.func @transform_2(%arg0: i32) -> (i32, i32) {
    %c0_i32 = arith.constant 0 : i32
    %c0_i32_0 = arith.constant 0 : i32
    %c0_i32_1 = arith.constant 0 : i32
    return %c0_i32, %c0_i32_0 : i32, i32
  }
  func.func @transform_3(%arg0: i32) -> (i32, i32) {
    %c0_i32 = arith.constant 0 : i32
    %c0_i32_0 = arith.constant 0 : i32
    %c0_i32_1 = arith.constant 0 : i32
    return %c0_i32, %c0_i32_0 : i32, i32
  }
  func.func @transform_4(%arg0: i32) -> (i32, i32) {
    %c0_i32 = arith.constant 0 : i32
    %c0_i32_0 = arith.constant 0 : i32
    %c0_i32_1 = arith.constant 0 : i32
    return %c0_i32, %c0_i32_0 : i32, i32
  }
  func.func @transform_5(%arg0: i32) -> (i32, i32) {
    %c0_i32 = arith.constant 0 : i32
    %c0_i32_0 = arith.constant 0 : i32
    return %arg0, %c0_i32 : i32, i32
  }
}

</mosaic_0001>

<bundles_post_ra>
// kernel: tpu_custom_call.1
= control target key start
LH: loop header
LB: loop body
LE: loop exit
PB: predicated region body
PF: predicated region fallthrough
CT: control target
= control target key end

     0   :  { %vm48_vm0 = vcmask 261120   ;;  %s1075_s0 = inlined_call_operand.vmem [shape: f32[16,32], index: 0, kind: input, shape index: {}]   ;;  %s1076_s1 = inlined_call_operand.vmem [shape: f32[32,128], index: 1, kind: input, shape index: {}]   ;;  %s1077_s2 = inlined_call_operand.vmem [shape: f32[1,128], index: 2, kind: input, shape index: {}]   ;;  %s1078_s3 = inlined_call_operand.vmem [shape: f32[128,32], index: 3, kind: input, shape index: {}]   ;;  %s1079_s4 = inlined_call_operand.vmem [shape: f32[1,32], index: 4, kind: input, shape index: {}]   ;;  %s1080_s5 = inlined_call_operand.hbm [shape: f32[16,32], index: 5, kind: output, shape index: {}]  }
   0x1   :  { %v24_v0 = vld [vmem:[%s1076_s1 + $0x18] sm:$0xff]  ;;  %v23_v1 = vld [vmem:[%s1076_s1 + $0x10] sm:$0xff]  ;;  %v22_v2 = vld [vmem:[%s1076_s1 + $0x8] sm:$0xff] }
   0x2   :  { %v741_v3 = vand.u32 4294901760, %v24_v0  ;;  %v743_v4 = vand.u32 4294901760, %v23_v1  ;;  %v745_v5 = vand.u32 4294901760, %v22_v2  ;;  %v21_v6 = vld [vmem:[%s1076_s1] sm:$0xff]  ;;  %v44_v8 = vld [vmem:[%s1075_s0 + $0x8] sm:$0xff] }
   0x3   :  { %v43_v7 = vld [vmem:[%s1075_s0] sm:$0xff]  ;;  %v756_v9 = vand.u32 4294901760, %v21_v6  ;;  %v53_v11 = vsel %vm48_vm0, %v44_v8, 0 }
   0x4   :  { %v50_v10 = vsel %vm48_vm0, %v43_v7, 0  ;;  %68 = vmatpush.msra.mxu0 %v741_v3  ;;  %v105_v12 = vsub.f32 %v24_v0, %v741_v3  ;;  %v111_v13 = vsub.f32 %v23_v1, %v743_v4  ;;  %185 = vmatpush.msra.mxu3 %v741_v3  ;;  %v765_v14 = vsub.f32 %v22_v2, %v745_v5 }
   0x5   :  { %v767_v15 = vand.u32 4294901760, %v50_v10 }
   0x6   :  { %10 = vsyncpa [#allocation3], 0  ;;  %v770_v16 = vsub.f32 %v21_v6, %v756_v9  ;;  %v772_v17 = vand.u32 4294901760, %v53_v11  ;;  %70 = vmatpush.msra.mxu0 %v743_v4  ;;  %151 = vmatpush.msra.mxu2 %v105_v12  ;;  %v106_v18 = vand.u32 4294901760, %v105_v12  ;;  %v112_v20 = vand.u32 4294901760, %v111_v13  ;;  %v41_v34 = vld [vmem:[%s1078_s3 + $0x78] sm:$0xff] }
   0x7   :  { %v76_v19 = vsub.f32 %v50_v10, %v767_v15  ;;  %v118_v21 = vand.u32 4294901760, %v765_v14  ;;  %187 = vmatpush.msra.mxu3 %v743_v4  ;;  %v40_v35 = vld [vmem:[%s1078_s3 + $0x70] sm:$0xff]  ;;  %v39_v36 = vld [vmem:[%s1078_s3 + $0x68] sm:$0xff]  ;;  %v802_v38 = vand.u32 4294901760, %v41_v34  ;;  %v38_v41 = vld [vmem:[%s1078_s3 + $0x60] sm:$0xff]  ;;  %s656_s13 = sshll.u32 %s1080_s5, 4  ;;  %s657_s13 = int_to_ptr.hbm [resolvable:$true] %s656_s13 }
   0x8   :  { %v124_v22 = vand.u32 4294901760, %v770_v16  ;;  %v780_v23 = vsub.f32 %v53_v11, %v772_v17  ;;  %72 = vmatpush.msra.mxu0 %v745_v5  ;;  %154 = vmatpush.msra.mxu2 %v111_v13  ;;  %v107_v24 = vsub.f32 %v105_v12, %v106_v18  ;;  %v113_v26 = vsub.f32 %v111_v13, %v112_v20  ;;  %v37_v42 = vld [vmem:[%s1078_s3 + $0x58] sm:$0xff]  ;;  %v36_v47 = vld [vmem:[%s1078_s3 + $0x50] sm:$0xff]  ;;  %v35_v48 = vld [vmem:[%s1078_s3 + $0x48] sm:$0xff]  ;;  %s700_s14 = smov 128   ;;  %s701_s15 = smov 8  }
   0x9   :  { %v77_v25 = vand.u32 4294901760, %v76_v19  ;;  %v119_v27 = vsub.f32 %v765_v14, %v118_v21  ;;  %189 = vmatpush.msra.mxu3 %v745_v5  ;;  %v804_v39 = vand.u32 4294901760, %v40_v35  ;;  %v806_v40 = vand.u32 4294901760, %v39_v36  ;;  %v34_v53 = vld [vmem:[%s1078_s3 + $0x40] sm:$0xff]  ;;  %v33_v8 = vld [vmem:[%s1078_s3 + $0x38] sm:$0xff] }
   0xa   :  { %v125_v28 = vsub.f32 %v770_v16, %v124_v22  ;;  %v85_v29 = vand.u32 4294901760, %v780_v23  ;;  %74 = vmatpush.msra.mxu0 %v756_v9  ;;  %v108_v30 = vand.u32 4294901760, %v107_v24  ;;  %157 = vmatpush.msra.mxu2 %v765_v14  ;;  %v114_v32 = vand.u32 4294901760, %v113_v26 }
   0xb   :  { %v78_v31 = vsub.f32 %v76_v19, %v77_v25  ;;  %v120_v33 = vand.u32 4294901760, %v119_v27  ;;  %191 = vmatpush.msra.mxu3 %v756_v9  ;;  %v815_v45 = vand.u32 4294901760, %v38_v41  ;;  %v817_v46 = vand.u32 4294901760, %v37_v42 }
   0xc   :  { %220 = vmatpush.msrb.mxu0 %v106_v18  ;;  %109 = vmatpush.msra.mxu1 %v108_v30  ;;  %v126_v43 = vand.u32 4294901760, %v125_v28  ;;  %v86_v44 = vsub.f32 %v780_v23, %v85_v29  ;;  %v826_v49 = vsub.f32 %v41_v34, %v802_v38  ;;  %v829_v50 = vsub.f32 %v40_v35, %v804_v39 }
   0xd   :  { %v79_v37 = vand.u32 4294901760, %v78_v31  ;;  %160 = vmatpush.msra.mxu2 %v770_v16  ;;  %195 = vmatmul.f32.vlgmr.msra.gmra.mxu3 %v77_v25  ;;  %v832_v51 = vsub.f32 %v39_v36, %v806_v40  ;;  %v834_v52 = vand.u32 4294901760, %v36_v47  ;;  %v840_v54 = vsub.f32 %v38_v41, %v815_v45  ;;  %v31_v31 = vld [vmem:[%s1078_s3 + $0x28] sm:$0xff] }
   0xe   :  { %163 = vmatmul.f32.vlgmr.msra.gmra.mxu2 %v76_v19  ;;  %115 = vmatpush.msra.mxu1 %v114_v32  ;;  %v844_v55 = vsub.f32 %v37_v42, %v817_v46  ;;  %v846_v56 = vand.u32 4294901760, %v35_v48  ;;  %v327_v57 = vand.u32 4294901760, %v826_v49  ;;  %v333_v58 = vand.u32 4294901760, %v829_v50 }
   0xf   :  { %80 = vmatmul.f32.vlgmr.msra.gmra.mxu0 %v79_v37  ;;  %277 = vmatpush.msrb.mxu2 %v802_v38  ;;  %v339_v59 = vand.u32 4294901760, %v832_v51  ;;  %v345_v60 = vand.u32 4294901760, %v840_v54  ;;  %v854_v61 = vsub.f32 %v36_v47, %v834_v52  ;;  %v856_v62 = vand.u32 4294901760, %v34_v53  ;;  %v29_v37 = vld [vmem:[%s1078_s3 + $0x18] sm:$0xff]  ;;  %v28_v47 = vld [vmem:[%s1078_s3 + $0x10] sm:$0xff] }
  0x10   :  { %224 = vmatpush.msrb.mxu0 %v112_v20  ;;  %121 = vmatpush.msra.mxu1 %v120_v33  ;;  %v87_v63 = vand.u32 4294901760, %v86_v44  ;;  %v328_v0 = vsub.f32 %v826_v49, %v327_v57  ;;  %v334_v1 = vsub.f32 %v829_v50, %v333_v58  ;;  %v351_v6 = vand.u32 4294901760, %v844_v55  ;;  %v30_v33 = vld [vmem:[%s1078_s3 + $0x20] sm:$0xff] }
  0x11   :  { %279 = vmatpush.msrb.mxu2 %v804_v39  ;;  %v340_v2 = vsub.f32 %v832_v51, %v339_v59  ;;  %v872_v7 = vsub.f32 %v35_v48, %v846_v56  ;;  %v346_v12 = vsub.f32 %v840_v54, %v345_v60  ;;  %v357_v13 = vand.u32 4294901760, %v854_v61 }
  0x12   :  { %228 = vmatpush.msrb.mxu0 %v118_v21  ;;  %127 = vmatpush.msra.mxu1 %v126_v43  ;;  %v329_v10 = vand.u32 4294901760, %v328_v0  ;;  %v335_v11 = vand.u32 4294901760, %v334_v1  ;;  %v885_v14 = vsub.f32 %v34_v53, %v856_v62  ;;  %v352_v18 = vsub.f32 %v844_v55, %v351_v6 }
  0x13   :  { %129 = vmatmul.f32.vlgmr.msra.gmra.mxu1 %v767_v15  ;;  %281 = vmatpush.msrb.mxu2 %v806_v40  ;;  %v341_v16 = vand.u32 4294901760, %v340_v2  ;;  %v363_v19 = vand.u32 4294901760, %v872_v7  ;;  %v358_v21 = vsub.f32 %v854_v61, %v357_v13  ;;  %v964_v36 = vand.u32 4294901760, %v30_v33  ;;  %v27_v2 = vld [vmem:[%s1078_s3 + $0x8] sm:$0xff] }
  0x14   :  { %232 = vmatpush.msrb.mxu0 %v124_v22  ;;  %255 = vmatpush.msrb.mxu1 %v741_v3  ;;  %v888_v3 = vand.u32 4294901760, %v33_v8  ;;  %v369_v22 = vand.u32 4294901760, %v885_v14  ;;  %v979_v44 = vand.u32 4294901760, %v29_v37  ;;  %v996_v1 = vand.u32 4294901760, %v28_v47 }
  0x15   :  { %201 = vmatmul.f32.gmra.mxu3 %v85_v29  ;;  %283 = vmatpush.msrb.mxu2 %v815_v45  ;;  %v359_v25 = vand.u32 4294901760, %v358_v21  ;;  %v977_v43 = vsub.f32 %v30_v33, %v964_v36 }
  0x16   :  { %168 = vmatmul.f32.gmra.mxu2 %v780_v23  ;;  %257 = vmatpush.msrb.mxu1 %v743_v4  ;;  %v897_v20 = vsub.f32 %v33_v8, %v888_v3  ;;  %v347_v4 = vand.u32 4294901760, %v346_v12  ;;  %v364_v23 = vsub.f32 %v872_v7, %v363_v19  ;;  %v992_v0 = vsub.f32 %v29_v37, %v979_v44 }
  0x17   :  { %88 = vmatmul.f32.gmra.mxu0 %v87_v63  ;;  %330 = vmatpush.msrb.mxu3 %v329_v10  ;;  %v393_v63 = vand.u32 4294901760, %v977_v43  ;;  %v1006_v12 = vand.u32 4294901760, %v27_v2 }
  0x18   :  { %259 = vmatpush.msrb.mxu1 %v745_v5  ;;  %432 = vmatpush.msra.mxu0 %v826_v49  ;;  %v353_v5 = vand.u32 4294901760, %v352_v18  ;;  %v375_v24 = vand.u32 4294901760, %v897_v20  ;;  %v365_v26 = vand.u32 4294901760, %v364_v23  ;;  %v26_v18 = vld [vmem:[%s1078_s3] sm:$0xff] }
  0x19   :  { %336 = vmatpush.msrb.mxu3 %v335_v11  ;;  %285 = vmatpush.msrb.mxu2 %v817_v46  ;;  %v394_v10 = vsub.f32 %v977_v43, %v393_v63  ;;  %v399_v11 = vand.u32 4294901760, %v992_v0  ;;  %v1017_v23 = vand.u32 4294901760, %v26_v18 }
  0x1a   :  { %261 = vmatpush.msrb.mxu1 %v756_v9  ;;  %435 = vmatpush.msra.mxu0 %v829_v50  ;;  %v370_v9 = vsub.f32 %v885_v14, %v369_v22  ;;  %v376_v27 = vsub.f32 %v897_v20, %v375_v24 }
  0x1b   :  { %133 = vmatmul.f32.gmra.mxu1 %v772_v17  ;;  %342 = vmatpush.msrb.mxu3 %v341_v16  ;;  %v404_v16 = vsub.f32 %v28_v47, %v996_v1  ;;  %v400_v21 = vsub.f32 %v992_v0, %v399_v11 }
  0x1c   :  { %287 = vmatpush.msrb.mxu2 %v834_v52  ;;  %490 = vmatpush.msra.mxu1 %v802_v38  ;;  %v371_v28 = vand.u32 4294901760, %v370_v9  ;;  %v377_v29 = vand.u32 4294901760, %v376_v27  ;;  %v416_v27 = vsub.f32 %v26_v18, %v1017_v23 }
  0x1d   :  { %348 = vmatpush.msrb.mxu3 %v347_v4  ;;  %438 = vmatpush.msra.mxu0 %v832_v51  ;;  %v395_v4 = vand.u32 4294901760, %v394_v10  ;;  %v401_v9 = vand.u32 4294901760, %v400_v21 }
  0x1e   :  { %289 = vmatpush.msrb.mxu2 %v846_v56  ;;  %492 = vmatpush.msra.mxu1 %v804_v39 }
  0x1f   :  { %234 = vmatmul.f32.vlgmr.msrb.gmra.mxu0 %v767_v15  ;;  %354 = vmatpush.msrb.mxu3 %v353_v5  ;;  %v410_v5 = vsub.f32 %v27_v2, %v1006_v12 }
  0x20   :  { %291 = vmatpush.msrb.mxu2 %v856_v62  ;;  %441 = vmatpush.msra.mxu0 %v840_v54 }
  0x21   :  { %360 = vmatpush.msrb.mxu3 %v359_v25  ;;  %494 = vmatpush.msra.mxu1 %v806_v40  ;;  %v405_v25 = vand.u32 4294901760, %v404_v16 }
  0x22   :  { %293 = vmatpush.msrb.mxu2 %v888_v3  ;;  %444 = vmatpush.msra.mxu0 %v844_v55 }
  0x23   :  { %263 = vmatmul.f32.vlgmr.msrb.gmra.mxu1 %v767_v15  ;;  %366 = vmatpush.msrb.mxu3 %v365_v26  ;;  %v32_v15 = vld [vmem:[%s1078_s3 + $0x30] sm:$0xff]  ;;  %v411_v26 = vand.u32 4294901760, %v410_v5 }
  0x24   :  { %496 = vmatpush.msra.mxu1 %v815_v45  ;;  %447 = vmatpush.msra.mxu0 %v854_v61  ;;  %v945_v30 = vand.u32 4294901760, %v32_v15 }
  0x25   :  { %372 = vmatpush.msrb.mxu3 %v371_v28  ;;  %v406_v28 = vsub.f32 %v404_v16, %v405_v25 }
  0x26   :  { %498 = vmatpush.msra.mxu1 %v817_v46  ;;  %450 = vmatpush.msra.mxu0 %v872_v7  ;;  %v951_v32 = vsub.f32 %v32_v15, %v945_v30  ;;  %v417_v15 = vand.u32 4294901760, %v416_v27 }
  0x27   :  { %238 = vmatmul.f32.gmra.mxu0 %v772_v17  ;;  %378 = vmatpush.msrb.mxu3 %v377_v29  ;;  %v412_v29 = vsub.f32 %v410_v5, %v411_v26 }
  0x28   :  { %500 = vmatpush.msra.mxu1 %v834_v52  ;;  %453 = vmatpush.msra.mxu0 %v885_v14  ;;  %v381_v34 = vand.u32 4294901760, %v951_v32  ;;  %v418_v37 = vsub.f32 %v416_v27, %v417_v15 }
  0x29   :  { %295 = vmatpush.msrb.mxu2 %v945_v30  ;;  %v413_v33 = vand.u32 4294901760, %v412_v29 }
  0x2a   :  { %502 = vmatpush.msra.mxu1 %v846_v56  ;;  %456 = vmatpush.msra.mxu0 %v897_v20  ;;  %v382_v41 = vsub.f32 %v951_v32, %v381_v34 }
  0x2b   :  { %267 = vmatmul.f32.gmra.mxu1 %v772_v17  ;;  %v953_v17 = vand.u32 4294901760, %v31_v31 }
  0x2c   :  { %504 = vmatpush.msra.mxu1 %v856_v62  ;;  %459 = vmatpush.msra.mxu0 %v951_v32  ;;  %v383_v48 = vand.u32 4294901760, %v382_v41  ;;  %v419_v41 = vand.u32 4294901760, %v418_v37 }
  0x2d   :  { %v962_v35 = vsub.f32 %v31_v31, %v953_v17  ;;  %297 = vmatpush.msrb.mxu2 %v953_v17  ;;  %v407_v31 = vand.u32 4294901760, %v406_v28 }
  0x2e   :  { %506 = vmatpush.msra.mxu1 %v888_v3  ;;  %384 = vmatpush.msrb.mxu3 %v383_v48 }
  0x2f   :  { %v387_v42 = vand.u32 4294901760, %v962_v35  ;;  %299 = vmatpush.msrb.mxu2 %v964_v36  ;;  %462 = vmatpush.msra.mxu0 %v962_v35 }
  0x30   :  { %508 = vmatpush.msra.mxu1 %v945_v30 }
  0x31   :  { %v388_v53 = vsub.f32 %v962_v35, %v387_v42  ;;  %301 = vmatpush.msrb.mxu2 %v979_v44  ;;  %465 = vmatpush.msra.mxu0 %v977_v43 }
  0x32   :  { %510 = vmatpush.msra.mxu1 %v953_v17 }
  0x33   :  { %v389_v8 = vand.u32 4294901760, %v388_v53  ;;  %468 = vmatpush.msra.mxu0 %v992_v0  ;;  %303 = vmatpush.msrb.mxu2 %v996_v1  ;;  %v672_v53 = vld [vmem:[%s1079_s4] ss:$0 sm:$0xff]  ;;  %s699_s4 = smov [#allocation2]  }
  0x34   :  { %512 = vmatpush.msra.mxu1 %v964_v36  ;;  %s654_s10 = sshll.u32 %s699_s4, 4  ;;  %s655_s10 = int_to_ptr.vmem [resolvable:$true] %s654_s10 }
  0x35   :  { %390 = vmatpush.msrb.mxu3 %v389_v8  ;;  %305 = vmatpush.msrb.mxu2 %v1006_v12 }
  0x36   :  { %514 = vmatpush.msra.mxu1 %v979_v44  ;;  %471 = vmatpush.msra.mxu0 %v404_v16 }
  0x37   :  { %396 = vmatpush.msrb.mxu3 %v395_v4  ;;  %307 = vmatpush.msrb.mxu2 %v1017_v23 }
  0x38   :  { %516 = vmatpush.msra.mxu1 %v996_v1  ;;  %474 = vmatpush.msra.mxu0 %v410_v5 }
  0x39   :  { %402 = vmatpush.msrb.mxu3 %v401_v9  ;;  %537 = vmatpush.msra.mxu2 %v327_v57 }
  0x3a   :  { %518 = vmatpush.msra.mxu1 %v1006_v12  ;;  %477 = vmatpush.msra.mxu0 %v416_v27 }
  0x3b   :  { %541 = vmatpush.msra.mxu2 %v333_v58  ;;  %408 = vmatpush.msrb.mxu3 %v407_v31 }
  0x3c   :  { %520 = vmatpush.msra.mxu1 %v1017_v23 }
  0x3d   :  { %545 = vmatpush.msra.mxu2 %v339_v59  ;;  %414 = vmatpush.msrb.mxu3 %v413_v33 }
  0x3f   :  { %549 = vmatpush.msra.mxu2 %v345_v60  ;;  %420 = vmatpush.msrb.mxu3 %v419_v41 }
  0x41   :  { %608 = vmatpush.msra.mxu3 %v802_v38  ;;  %553 = vmatpush.msra.mxu2 %v351_v6 }
  0x43   :  { %610 = vmatpush.msra.mxu3 %v804_v39  ;;  %557 = vmatpush.msra.mxu2 %v357_v13  ;;  %v671_v39 = vld [vmem:[%s1077_s2] ss:$0 sm:$0xff] }
  0x45   :  { %612 = vmatpush.msra.mxu3 %v806_v40  ;;  %561 = vmatpush.msra.mxu2 %v363_v19 }
  0x47   :  { %614 = vmatpush.msra.mxu3 %v815_v45  ;;  %565 = vmatpush.msra.mxu2 %v369_v22 }
  0x49   :  { %616 = vmatpush.msra.mxu3 %v817_v46  ;;  %569 = vmatpush.msra.mxu2 %v375_v24 }
  0x4b   :  { %618 = vmatpush.msra.mxu3 %v834_v52  ;;  %573 = vmatpush.msra.mxu2 %v381_v34 }
  0x4d   :  { %620 = vmatpush.msra.mxu3 %v846_v56  ;;  %577 = vmatpush.msra.mxu2 %v387_v42 }
  0x4f   :  { %622 = vmatpush.msra.mxu3 %v856_v62  ;;  %581 = vmatpush.msra.mxu2 %v393_v63 }
  0x51   :  { %624 = vmatpush.msra.mxu3 %v888_v3  ;;  %585 = vmatpush.msra.mxu2 %v399_v11 }
  0x53   :  { %626 = vmatpush.msra.mxu3 %v945_v30  ;;  %589 = vmatpush.msra.mxu2 %v405_v25 }
  0x55   :  { %628 = vmatpush.msra.mxu3 %v953_v17  ;;  %593 = vmatpush.msra.mxu2 %v411_v26 }
  0x57   :  { %630 = vmatpush.msra.mxu3 %v964_v36  ;;  %597 = vmatpush.msra.mxu2 %v417_v15 }
  0x59   :  { %632 = vmatpush.msra.mxu3 %v979_v44 }
  0x5b   :  { %634 = vmatpush.msra.mxu3 %v996_v1 }
  0x5d   :  { %636 = vmatpush.msra.mxu3 %v1006_v12 }
  0x5f   :  { %638 = vmatpush.msra.mxu3 %v1017_v23 }
  0x8c   :  { %v81_v38 = vpop.f32.mrf.mxu0 }
  0x8d   :  { %v82_v45 = vadd.f32 %v671_v39, %v81_v38 }
  0x90   :  { %v130_v40 = vpop.f32.mrf.mxu1  ;;  %v196_v51 = vpop.f32.mrf.mxu3 }
  0x91   :  { %v164_v49 = vpop.f32.mrf.mxu2  ;;  %v131_v50 = vadd.f32 %v130_v40, %v82_v45 }
  0x93   :  { %v165_v55 = vadd.f32 %v164_v49, %v131_v50 }
  0x94   :  { %v89_v46 = vpop.f32.mrf.mxu0 }
  0x95   :  { %v90_v54 = vadd.f32 %v671_v39, %v89_v46  ;;  %v197_v57 = vadd.f32 %v196_v51, %v165_v55 }
  0x98   :  { %v134_v52 = vpop.f32.mrf.mxu1  ;;  %v202_v7 = vpop.f32.mrf.mxu3 }
  0x99   :  { %v135_v58 = vadd.f32 %v134_v52, %v90_v54  ;;  %v169_v59 = vpop.f32.mrf.mxu2 }
  0x9b   :  { %v170_v62 = vadd.f32 %v169_v59, %v135_v58 }
  0x9c   :  { %v235_v56 = vpop.f32.mrf.mxu0 }
  0x9d   :  { %v236_v60 = vadd.f32 %v235_v56, %v197_v57  ;;  %v203_v3 = vadd.f32 %v202_v7, %v170_v62 }
  0xa0   :  { %v264_v61 = vpop.f32.mrf.mxu1 }
  0xa1   :  { %v265_v6 = vadd.f32 %v264_v61, %v236_v60 }
  0xa3   :  { %v271_v13 = vmax.f32 %v265_v6, 0.0 }
  0xa4   :  { %v239_v14 = vpop.f32.mrf.mxu0 }
  0xa5   :  { %v308_v19 = vand.u32 4294901760, %v271_v13  ;;  %v240_v22 = vadd.f32 %v239_v14, %v203_v3 }
  0xa7   :  { %v309_v20 = vsub.f32 %v271_v13, %v308_v19  ;;  %422 = vmatmul.f32.vlgmr.msrb.gmra.mxu3 %v308_v19 }
  0xa8   :  { %v268_v24 = vpop.f32.mrf.mxu1 }
  0xa9   :  { %v269_v30 = vadd.f32 %v268_v24, %v240_v22  ;;  %480 = vmatmul.f32.vlgmr.msra.gmra.mxu0 %v309_v20  ;;  %v310_v32 = vand.u32 4294901760, %v309_v20 }
  0xab   :  { %v272_v17 = vmax.f32 %v269_v30, 0.0  ;;  %524 = vmatmul.f32.vlgmr.msra.gmra.mxu1 %v310_v32  ;;  %v311_v34 = vsub.f32 %v309_v20, %v310_v32 }
  0xad   :  { %v316_v35 = vand.u32 4294901760, %v272_v17  ;;  %v312_v36 = vand.u32 4294901760, %v311_v34 }
  0xaf   :  { %v317_v42 = vsub.f32 %v272_v17, %v316_v35  ;;  %313 = vmatmul.f32.vlgmr.msrb.gmra.mxu2 %v312_v36  ;;  %426 = vmatmul.f32.gmra.mxu3 %v316_v35 }
  0xb1   :  { %485 = vmatmul.f32.gmra.mxu0 %v317_v42  ;;  %v318_v43 = vand.u32 4294901760, %v317_v42 }
  0xb3   :  { %530 = vmatmul.f32.gmra.mxu1 %v318_v43  ;;  %v319_v44 = vsub.f32 %v317_v42, %v318_v43 }
  0xb5   :  { %v320_v47 = vand.u32 4294901760, %v319_v44 }
  0xb7   :  { %321 = vmatmul.f32.gmra.mxu2 %v320_v47  ;;  %640 = vmatmul.f32.vlgmr.msra.gmra.mxu3 %v308_v19 }
  0xbf   :  { %599 = vmatmul.f32.vlgmr.msra.gmra.mxu2 %v308_v19  ;;  %644 = vmatmul.f32.gmra.mxu3 %v316_v35 }
  0xc7   :  { %603 = vmatmul.f32.gmra.mxu2 %v316_v35 }
 0x126   :  { %v481_v8 = vpop.f32.mrf.mxu0 }
 0x128   :  { %v525_v16 = vpop.f32.mrf.mxu1 }
 0x12a   :  { %v423_v48 = vpop.f32.mrf.mxu3 }
 0x12e   :  { %v486_v25 = vpop.f32.mrf.mxu0 }
 0x130   :  { %v531_v27 = vpop.f32.mrf.mxu1 }
 0x132   :  { %v314_v63 = vpop.f32.mrf.mxu2  ;;  %v427_v1 = vpop.f32.mrf.mxu3 }
 0x133   :  { %v315_v0 = vadd.f32 %v672_v53, %v314_v63 }
 0x135   :  { %v424_v2 = vadd.f32 %v423_v48, %v315_v0 }
 0x137   :  { %v482_v12 = vadd.f32 %v481_v8, %v424_v2 }
 0x139   :  { %v526_v4 = vadd.f32 %v525_v16, %v482_v12 }
 0x13a   :  { %v322_v10 = vpop.f32.mrf.mxu2  ;;  %v641_v21 = vpop.f32.mrf.mxu3 }
 0x13b   :  { %v323_v11 = vadd.f32 %v672_v53, %v322_v10 }
 0x13d   :  { %v428_v18 = vadd.f32 %v427_v1, %v323_v11 }
 0x13f   :  { %v487_v26 = vadd.f32 %v486_v25, %v428_v18 }
 0x141   :  { %v532_v28 = vadd.f32 %v531_v27, %v487_v26 }
 0x142   :  { %v600_v5 = vpop.f32.mrf.mxu2  ;;  %v645_v31 = vpop.f32.mrf.mxu3 }
 0x143   :  { %v601_v23 = vadd.f32 %v600_v5, %v526_v4 }
 0x145   :  { %v642_v9 = vadd.f32 %v641_v21, %v601_v23 }
 0x147   :  { %648 = vst.msk [vmem:[#allocation2] sm:$0xff] %vm48_vm0, %v642_v9 }
 0x14a   :  { %v604_v29 = vpop.f32.mrf.mxu2 }
 0x14b   :  { %v605_v15 = vadd.f32 %v604_v29, %v532_v28 }
 0x14d   :  { %v646_v33 = vadd.f32 %v645_v31, %v605_v15 }
 0x14f   :  { %649 = vst.msk [vmem:[#allocation2 + $0x8] sm:$0xff] %vm48_vm0, %v646_v33 }
 0x150   :  { %662 = dma.vmem_to_hbm [thread:$0]  %s655_s10, 256, %s657_s13, [#allocation3], %s700_s14, %s700_s14, %s701_s15  }
 0x151   :  { %697 = dma.done.wait [#allocation3], 256  }
 0x152   :  { %698 = vsyncadd [#allocation3], 4294967040 }
 0x153   :  { %667 = vsyncpa [#allocation3], 1 }

</bundles_post_ra>
